<compile_context>
chip_gen: v7x
topology: tpu7x:2x2x1
jax: 0.10.0
libtpu: 0.0.40
codegen_flags: <defaults>
</compile_context>

<pallas_src>
import math

import jax
import jax.numpy as jnp
from jax.experimental import pallas as pl
from jax.experimental.pallas import tpu as pltpu

INPUT_DIM = 8               # input_dim
H1 = 16                     # h1 (encoder hidden / first MLP width)
H2 = 32                     # h2
BED = 4                     # bayesian_embedding_dim
OUT_DIM = 6                 # output_dim
FEAT_IN = INPUT_DIM + BED   # 12 : concat([x, emb]) feature rows


def blue_mi_kernel(xe_ref, wg_ref, bg_ref, bhn_ref,
                   w1z_ref, w1e_ref, b1_ref,
                   w2_ref, b2_ref, w3_ref, b3_ref,
                   out_ref, z_ref):
    # xe_ref: (FEAT_IN, BM) slab; rows 0:8 = x^T, rows 8:12 = emb^T.
    xe = xe_ref[...]

    # ---- EncoderRNN: single-step GRU cell, h0 = 0 --------------------------
    # gi = W_ih @ x + (b_ih [+ b_hh folded for r,z gates]);  W_hh @ h0 == 0.
    gi = jnp.dot(wg_ref[...], xe, preferred_element_type=jnp.float32) + bg_ref[...]
    r = jax.nn.sigmoid(gi[0:H1, :])                        # sublane slice @0
    zg = jax.nn.sigmoid(gi[H1:2 * H1, :])                  # sublane slice @16
    n = jnp.tanh(gi[2 * H1:3 * H1, :] + r * bhn_ref[...])  # sublane slice @32
    z = (1.0 - zg) * n                                     # h' = (1 - zg) * n
    z_ref[...] = z

    # ---- self.network on concat([z, emb]) ----------------------------------
    # W1 @ [z; emb] realised as W1z @ z + W1e_padded @ xe (zero cols on x part)
    a1 = jnp.maximum(
        jnp.dot(w1z_ref[...], z, preferred_element_type=jnp.float32)
        + jnp.dot(w1e_ref[...], xe, preferred_element_type=jnp.float32)
        + b1_ref[...], 0.0)                                              # ReLU
    a2 = jnp.maximum(
        jnp.dot(w2_ref[...], a1, preferred_element_type=jnp.float32)
        + b2_ref[...], 0.0)                                              # ReLU
    out_ref[...] = (jnp.dot(w3_ref[...], a2, preferred_element_type=jnp.float32)
                    + b3_ref[...])


def blue_mi_forward(x, emb, kp, *, block_b=512):
    """x: (B, INPUT_DIM), emb: (B, BED) -> (out (B, OUT_DIM), z (B, H1))."""
    B = x.shape[0]
    n_blocks = -(-B // block_b)
    Bp = n_blocks * block_b

    # One lane-dense input slab: (FEAT_IN, Bp), batch padded to block multiple.
    xe = jnp.concatenate([x.astype(jnp.float32), emb.astype(jnp.float32)], axis=1)
    xe_t = jnp.pad(xe, ((0, Bp - B), (0, 0))).T            # (12, Bp)

    weights = (kp["wg"], kp["bg"], kp["bhn"],
               kp["w1z"], kp["w1e"], kp["b1"],
               kp["w2"], kp["b2"], kp["w3"], kp["b3"])

    def resident(arr):  # full-array block, constant index map -> stays in VMEM
        return pl.BlockSpec(arr.shape, lambda i: (0, 0))

    out_t, z_t = pl.pallas_call(
        blue_mi_kernel,
        out_shape=(jax.ShapeDtypeStruct((OUT_DIM, Bp), jnp.float32),
                   jax.ShapeDtypeStruct((H1, Bp), jnp.float32)),
        grid=(n_blocks,),
        in_specs=[pl.BlockSpec((FEAT_IN, block_b), lambda i: (0, i))]
                 + [resident(w) for w in weights],
        out_specs=(pl.BlockSpec((OUT_DIM, block_b), lambda i: (0, i)),
                   pl.BlockSpec((H1, block_b), lambda i: (0, i))),
        compiler_params=pltpu.CompilerParams(
            dimension_semantics=("parallel",)),
    )(xe_t, *weights)

    # Back to the module's (batch, feature) contract; drop batch padding.
    return out_t[:, :B].T, z_t[:, :B].T


def init_params(key):
    ks = jax.random.split(key, 6)

    def xavier(k, out_f, in_f):   # nn.init.xavier_uniform_ on (out, in) weight
        bound = math.sqrt(6.0 / (in_f + out_f))
        return jax.random.uniform(k, (out_f, in_f), jnp.float32, -bound, bound)

    s = 1.0 / math.sqrt(H1)       # PyTorch default GRU init
    w_ih = jax.random.uniform(ks[0], (3 * H1, INPUT_DIM), jnp.float32, -s, s)
    b_ih = jax.random.uniform(ks[1], (3 * H1,), jnp.float32, -s, s)
    b_hh = jax.random.uniform(ks[2], (3 * H1,), jnp.float32, -s, s)

    w1 = xavier(ks[3], H1, H1 + BED)     # Linear(h1 + bed, h1)
    w2 = xavier(ks[4], H2, H1)           # Linear(h1, h2)
    w3 = xavier(ks[5], OUT_DIM, H2)      # Linear(h2, output_dim)
    b1 = jnp.zeros((H1,), jnp.float32)   # module uses nn.init.zeros_ on biases
    b2 = jnp.zeros((H2,), jnp.float32)
    b3 = jnp.zeros((OUT_DIM,), jnp.float32)

    torch_params = dict(w_ih=w_ih, b_ih=b_ih, b_hh=b_hh,
                        w1=w1, b1=b1, w2=w2, b2=b2, w3=w3, b3=b3)

    # ---- kernel layout (feature-major, gate-fused, zero-padded for the slab)
    wg = jnp.zeros((3 * H1, FEAT_IN), jnp.float32).at[:, :INPUT_DIM].set(w_ih)
    bg = jnp.concatenate([
        b_ih[:H1] + b_hh[:H1],                 # r gate: fold b_hr (h0 == 0)
        b_ih[H1:2 * H1] + b_hh[H1:2 * H1],     # z gate: fold b_hz
        b_ih[2 * H1:],                         # n gate: b_hn stays separate
    ]).reshape(3 * H1, 1)
    bhn = b_hh[2 * H1:].reshape(H1, 1)
    w1e = jnp.zeros((H1, FEAT_IN), jnp.float32).at[:, INPUT_DIM:].set(w1[:, H1:])

    kernel_params = dict(
        wg=wg, bg=bg, bhn=bhn,
        w1z=w1[:, :H1], w1e=w1e, b1=b1.reshape(H1, 1),
        w2=w2, b2=b2.reshape(H2, 1),
        w3=w3, b3=b3.reshape(OUT_DIM, 1),
    )
    return torch_params, kernel_params


def reference_forward(x, emb, p):
    gi = x @ p["w_ih"].T + p["b_ih"]
    gh = p["b_hh"]                              # W_hh @ h0 == 0
    r = jax.nn.sigmoid(gi[:, :H1] + gh[:H1])
    zg = jax.nn.sigmoid(gi[:, H1:2 * H1] + gh[H1:2 * H1])
    n = jnp.tanh(gi[:, 2 * H1:] + r * gh[2 * H1:])
    z = (1.0 - zg) * n
    ins = jnp.concatenate([z, emb], axis=1)
    a1 = jnp.maximum(ins @ p["w1"].T + p["b1"], 0.0)
    a2 = jnp.maximum(a1 @ p["w2"].T + p["b2"], 0.0)
    return a2 @ p["w3"].T + p["b3"], z


if __name__ == "__main__":
    key = jax.random.PRNGKey(0)
    kx, ke, kparam = jax.random.split(key, 3)

    B = 2
    x = jax.random.normal(kx, (B, INPUT_DIM), jnp.float32)
    emb = jax.random.normal(ke, (B, BED), jnp.float32)
    torch_p, kern_p = init_params(kparam)

    out, z = blue_mi_forward(x, emb, kern_p)
    out = jax.block_until_ready(out)
    z = jax.block_until_ready(z)

    out_ref, z_ref = reference_forward(x, emb, torch_p)
    assert out.shape == (B, OUT_DIM) and z.shape == (B, H1)
    assert jnp.allclose(out, out_ref, atol=1e-5, rtol=1e-5)
    assert jnp.allclose(z, z_ref, atol=1e-5, rtol=1e-5)

    print("KERNEL_OK")
</pallas_src>

<mosaic_0001>
module attributes {stable_mosaic.version = 11 : i64} {
  func.func @blue_mi_kernel(%arg0: i32, %arg1: memref<12x512xf32, #tpu.memory_space<vmem>>, %arg2: memref<48x12xf32, #tpu.memory_space<vmem>>, %arg3: memref<48x1xf32, #tpu.memory_space<vmem>>, %arg4: memref<16x1xf32, #tpu.memory_space<vmem>>, %arg5: memref<16x16xf32, #tpu.memory_space<vmem>>, %arg6: memref<16x12xf32, #tpu.memory_space<vmem>>, %arg7: memref<16x1xf32, #tpu.memory_space<vmem>>, %arg8: memref<32x16xf32, #tpu.memory_space<vmem>>, %arg9: memref<32x1xf32, #tpu.memory_space<vmem>>, %arg10: memref<6x32xf32, #tpu.memory_space<vmem>>, %arg11: memref<6x1xf32, #tpu.memory_space<vmem>>, %arg12: memref<6x512xf32, #tpu.memory_space<vmem>>, %arg13: memref<16x512xf32, #tpu.memory_space<vmem>>) attributes {dimension_semantics = [#tpu.dimension_semantics<parallel>], iteration_bounds = array<i64: 1>, scalar_prefetch = 0 : i64, scratch_operands = 0 : i64, tpu.core_type = #tpu.core_type<tc>, window_params = [{transform_indices = @transform_0, window_bounds = array<i64: 12, 512>}, {pipeline_mode = #tpu.pipeline_mode<synchronous>, transform_indices = @transform_1, window_bounds = array<i64: 48, 12>}, {pipeline_mode = #tpu.pipeline_mode<synchronous>, transform_indices = @transform_2, window_bounds = array<i64: 48, 1>}, {pipeline_mode = #tpu.pipeline_mode<synchronous>, transform_indices = @transform_3, window_bounds = array<i64: 16, 1>}, {pipeline_mode = #tpu.pipeline_mode<synchronous>, transform_indices = @transform_4, window_bounds = array<i64: 16, 16>}, {pipeline_mode = #tpu.pipeline_mode<synchronous>, transform_indices = @transform_5, window_bounds = array<i64: 16, 12>}, {pipeline_mode = #tpu.pipeline_mode<synchronous>, transform_indices = @transform_6, window_bounds = array<i64: 16, 1>}, {pipeline_mode = #tpu.pipeline_mode<synchronous>, transform_indices = @transform_7, window_bounds = array<i64: 32, 16>}, {pipeline_mode = #tpu.pipeline_mode<synchronous>, transform_indices = @transform_8, window_bounds = array<i64: 32, 1>}, {pipeline_mode = #tpu.pipeline_mode<synchronous>, transform_indices = @transform_9, window_bounds = array<i64: 6, 32>}, {pipeline_mode = #tpu.pipeline_mode<synchronous>, transform_indices = @transform_10, window_bounds = array<i64: 6, 1>}, {transform_indices = @transform_11, window_bounds = array<i64: 6, 512>}, {transform_indices = @transform_12, window_bounds = array<i64: 16, 512>}]} {
    %c0 = arith.constant 0 : index
    %c0_0 = arith.constant 0 : index
    %0 = vector.load %arg1[%c0, %c0_0] : memref<12x512xf32, #tpu.memory_space<vmem>>, vector<12x512xf32>
    %c0_1 = arith.constant 0 : index
    %c0_2 = arith.constant 0 : index
    %1 = vector.load %arg2[%c0_1, %c0_2] : memref<48x12xf32, #tpu.memory_space<vmem>>, vector<48x12xf32>
    %cst = arith.constant dense<0.000000e+00> : vector<48x512xf32>
    %2 = tpu.matmul %1, %0, %cst {dimension_numbers = #tpu.dot_dimension_numbers<[1], [0], [0], [1], [0, 0, 1, 1], [], []>} : vector<48x12xf32>, vector<12x512xf32>, vector<48x512xf32> -> vector<48x512xf32>
    %c0_3 = arith.constant 0 : index
    %c0_4 = arith.constant 0 : index
    %3 = vector.load %arg3[%c0_3, %c0_4] : memref<48x1xf32, #tpu.memory_space<vmem>>, vector<48x1xf32>
    %4 = vector.broadcast %3 : vector<48x1xf32> to vector<48x512xf32>
    %5 = arith.addf %2, %4 : vector<48x512xf32>
    %6 = vector.extract_strided_slice %5 {offsets = [0, 0], sizes = [16, 512], strides = [1, 1]} : vector<48x512xf32> to vector<16x512xf32>
    %7 = arith.negf %6 : vector<16x512xf32>
    %8 = math.exp %7 : vector<16x512xf32>
    %cst_5 = arith.constant 1.000000e+00 : f32
    %9 = vector.broadcast %cst_5 : f32 to vector<16x512xf32>
    %10 = arith.addf %9, %8 : vector<16x512xf32>
    %11 = arith.divf %9, %10 : vector<16x512xf32>
    %12 = vector.extract_strided_slice %5 {offsets = [16, 0], sizes = [16, 512], strides = [1, 1]} : vector<48x512xf32> to vector<16x512xf32>
    %13 = arith.negf %12 : vector<16x512xf32>
    %14 = math.exp %13 : vector<16x512xf32>
    %cst_6 = arith.constant 1.000000e+00 : f32
    %15 = vector.broadcast %cst_6 : f32 to vector<16x512xf32>
    %16 = arith.addf %15, %14 : vector<16x512xf32>
    %17 = arith.divf %15, %16 : vector<16x512xf32>
    %18 = vector.extract_strided_slice %5 {offsets = [32, 0], sizes = [16, 512], strides = [1, 1]} : vector<48x512xf32> to vector<16x512xf32>
    %c0_7 = arith.constant 0 : index
    %c0_8 = arith.constant 0 : index
    %19 = vector.load %arg4[%c0_7, %c0_8] : memref<16x1xf32, #tpu.memory_space<vmem>>, vector<16x1xf32>
    %20 = vector.broadcast %19 : vector<16x1xf32> to vector<16x512xf32>
    %21 = arith.mulf %11, %20 : vector<16x512xf32>
    %22 = arith.addf %18, %21 : vector<16x512xf32>
    %23 = math.tanh %22 : vector<16x512xf32>
    %cst_9 = arith.constant 1.000000e+00 : f32
    %24 = vector.broadcast %cst_9 : f32 to vector<16x512xf32>
    %25 = arith.subf %24, %17 : vector<16x512xf32>
    %26 = arith.mulf %25, %23 : vector<16x512xf32>
    %c0_10 = arith.constant 0 : index
    %c0_11 = arith.constant 0 : index
    %27 = vector.load %arg13[%c0_10, %c0_11] : memref<16x512xf32, #tpu.memory_space<vmem>>, vector<16x512xf32>
    tpu.vector_store %arg13[%c0_10, %c0_11], %26 {strides = array<i32>} : memref<16x512xf32, #tpu.memory_space<vmem>>, vector<16x512xf32>,
    %c0_12 = arith.constant 0 : index
    %c0_13 = arith.constant 0 : index
    %28 = vector.load %arg5[%c0_12, %c0_13] : memref<16x16xf32, #tpu.memory_space<vmem>>, vector<16x16xf32>
    %cst_14 = arith.constant dense<0.000000e+00> : vector<16x512xf32>
    %29 = tpu.matmul %28, %26, %cst_14 {dimension_numbers = #tpu.dot_dimension_numbers<[1], [0], [0], [1], [0, 0, 1, 1], [], []>} : vector<16x16xf32>, vector<16x512xf32>, vector<16x512xf32> -> vector<16x512xf32>
    %c0_15 = arith.constant 0 : index
    %c0_16 = arith.constant 0 : index
    %30 = vector.load %arg6[%c0_15, %c0_16] : memref<16x12xf32, #tpu.memory_space<vmem>>, vector<16x12xf32>
    %cst_17 = arith.constant dense<0.000000e+00> : vector<16x512xf32>
    %31 = tpu.matmul %30, %0, %cst_17 {dimension_numbers = #tpu.dot_dimension_numbers<[1], [0], [0], [1], [0, 0, 1, 1], [], []>} : vector<16x12xf32>, vector<12x512xf32>, vector<16x512xf32> -> vector<16x512xf32>
    %32 = arith.addf %29, %31 : vector<16x512xf32>
    %c0_18 = arith.constant 0 : index
    %c0_19 = arith.constant 0 : index
    %33 = vector.load %arg7[%c0_18, %c0_19] : memref<16x1xf32, #tpu.memory_space<vmem>>, vector<16x1xf32>
    %34 = vector.broadcast %33 : vector<16x1xf32> to vector<16x512xf32>
    %35 = arith.addf %32, %34 : vector<16x512xf32>
    %cst_20 = arith.constant 0.000000e+00 : f32
    %36 = vector.broadcast %cst_20 : f32 to vector<16x512xf32>
    %37 = arith.maximumf %35, %36 : vector<16x512xf32>
    %c0_21 = arith.constant 0 : index
    %c0_22 = arith.constant 0 : index
    %38 = vector.load %arg8[%c0_21, %c0_22] : memref<32x16xf32, #tpu.memory_space<vmem>>, vector<32x16xf32>
    %cst_23 = arith.constant dense<0.000000e+00> : vector<32x512xf32>
    %39 = tpu.matmul %38, %37, %cst_23 {dimension_numbers = #tpu.dot_dimension_numbers<[1], [0], [0], [1], [0, 0, 1, 1], [], []>} : vector<32x16xf32>, vector<16x512xf32>, vector<32x512xf32> -> vector<32x512xf32>
    %c0_24 = arith.constant 0 : index
    %c0_25 = arith.constant 0 : index
    %40 = vector.load %arg9[%c0_24, %c0_25] : memref<32x1xf32, #tpu.memory_space<vmem>>, vector<32x1xf32>
    %41 = vector.broadcast %40 : vector<32x1xf32> to vector<32x512xf32>
    %42 = arith.addf %39, %41 : vector<32x512xf32>
    %cst_26 = arith.constant 0.000000e+00 : f32
    %43 = vector.broadcast %cst_26 : f32 to vector<32x512xf32>
    %44 = arith.maximumf %42, %43 : vector<32x512xf32>
    %c0_27 = arith.constant 0 : index
    %c0_28 = arith.constant 0 : index
    %45 = vector.load %arg10[%c0_27, %c0_28] : memref<6x32xf32, #tpu.memory_space<vmem>>, vector<6x32xf32>
    %cst_29 = arith.constant dense<0.000000e+00> : vector<6x512xf32>
    %46 = tpu.matmul %45, %44, %cst_29 {dimension_numbers = #tpu.dot_dimension_numbers<[1], [0], [0], [1], [0, 0, 1, 1], [], []>} : vector<6x32xf32>, vector<32x512xf32>, vector<6x512xf32> -> vector<6x512xf32>
    %c0_30 = arith.constant 0 : index
    %c0_31 = arith.constant 0 : index
    %47 = vector.load %arg11[%c0_30, %c0_31] : memref<6x1xf32, #tpu.memory_space<vmem>>, vector<6x1xf32>
    %48 = vector.broadcast %47 : vector<6x1xf32> to vector<6x512xf32>
    %49 = arith.addf %46, %48 : vector<6x512xf32>
    %c0_32 = arith.constant 0 : index
    %c0_33 = arith.constant 0 : index
    %50 = vector.load %arg12[%c0_32, %c0_33] : memref<6x512xf32, #tpu.memory_space<vmem>>, vector<6x512xf32>
    tpu.vector_store %arg12[%c0_32, %c0_33], %49 {strides = array<i32>} : memref<6x512xf32, #tpu.memory_space<vmem>>, vector<6x512xf32>,
    return
  }
  func.func @transform_0(%arg0: i32) -> (i32, i32) {
    %c0_i32 = arith.constant 0 : i32
    %c0_i32_0 = arith.constant 0 : i32
    return %c0_i32, %arg0 : i32, i32
  }
  func.func @transform_1(%arg0: i32) -> (i32, i32) {
    %c0_i32 = arith.constant 0 : i32
    %c0_i32_0 = arith.constant 0 : i32
    %c0_i32_1 = arith.constant 0 : i32
    return %c0_i32, %c0_i32_0 : i32, i32
  }
  func.func @transform_2(%arg0: i32) -> (i32, i32) {
    %c0_i32 = arith.constant 0 : i32
    %c0_i32_0 = arith.constant 0 : i32
    %c0_i32_1 = arith.constant 0 : i32
    return %c0_i32, %c0_i32_0 : i32, i32
  }
  func.func @transform_3(%arg0: i32) -> (i32, i32) {
    %c0_i32 = arith.constant 0 : i32
    %c0_i32_0 = arith.constant 0 : i32
    %c0_i32_1 = arith.constant 0 : i32
    return %c0_i32, %c0_i32_0 : i32, i32
  }
  func.func @transform_4(%arg0: i32) -> (i32, i32) {
    %c0_i32 = arith.constant 0 : i32
    %c0_i32_0 = arith.constant 0 : i32
    %c0_i32_1 = arith.constant 0 : i32
    return %c0_i32, %c0_i32_0 : i32, i32
  }
  func.func @transform_5(%arg0: i32) -> (i32, i32) {
    %c0_i32 = arith.constant 0 : i32
    %c0_i32_0 = arith.constant 0 : i32
    %c0_i32_1 = arith.constant 0 : i32
    return %c0_i32, %c0_i32_0 : i32, i32
  }
  func.func @transform_6(%arg0: i32) -> (i32, i32) {
    %c0_i32 = arith.constant 0 : i32
    %c0_i32_0 = arith.constant 0 : i32
    %c0_i32_1 = arith.constant 0 : i32
    return %c0_i32, %c0_i32_0 : i32, i32
  }
  func.func @transform_7(%arg0: i32) -> (i32, i32) {
    %c0_i32 = arith.constant 0 : i32
    %c0_i32_0 = arith.constant 0 : i32
    %c0_i32_1 = arith.constant 0 : i32
    return %c0_i32, %c0_i32_0 : i32, i32
  }
  func.func @transform_8(%arg0: i32) -> (i32, i32) {
    %c0_i32 = arith.constant 0 : i32
    %c0_i32_0 = arith.constant 0 : i32
    %c0_i32_1 = arith.constant 0 : i32
    return %c0_i32, %c0_i32_0 : i32, i32
  }
  func.func @transform_9(%arg0: i32) -> (i32, i32) {
    %c0_i32 = arith.constant 0 : i32
    %c0_i32_0 = arith.constant 0 : i32
    %c0_i32_1 = arith.constant 0 : i32
    return %c0_i32, %c0_i32_0 : i32, i32
  }
  func.func @transform_10(%arg0: i32) -> (i32, i32) {
    %c0_i32 = arith.constant 0 : i32
    %c0_i32_0 = arith.constant 0 : i32
    %c0_i32_1 = arith.constant 0 : i32
    return %c0_i32, %c0_i32_0 : i32, i32
  }
  func.func @transform_11(%arg0: i32) -> (i32, i32) {
    %c0_i32 = arith.constant 0 : i32
    %c0_i32_0 = arith.constant 0 : i32
    return %c0_i32, %arg0 : i32, i32
  }
  func.func @transform_12(%arg0: i32) -> (i32, i32) {
    %c0_i32 = arith.constant 0 : i32
    %c0_i32_0 = arith.constant 0 : i32
    return %c0_i32, %arg0 : i32, i32
  }
}

</mosaic_0001>

<bundles_post_ra>
// kernel: tpu_custom_call.1
= control target key start
LH: loop header
LB: loop body
LE: loop exit
PB: predicated region body
PF: predicated region fallthrough
CT: control target
= control target key end

     0   :  { %18 = vsyncpa [#allocation3], 0  ;;  %vm111_vm0 = vcmask 1043456   ;;  %vm1511_vm1 = vmmov 1   ;;  %v1512_v11 = vmov 0.0   ;;  %v1513_v14 = vmov 0   ;;  %s1808_s0 = inlined_call_operand.vmem [shape: f32[12,512], index: 0, kind: input, shape index: {}]   ;;  %s1809_s1 = inlined_call_operand.vmem [shape: f32[48,12], index: 1, kind: input, shape index: {}]   ;;  %s1810_s2 = inlined_call_operand.vmem [shape: f32[48,1], index: 2, kind: input, shape index: {}]   ;;  %s1811_s3 = inlined_call_operand.vmem [shape: f32[16,1], index: 3, kind: input, shape index: {}]   ;;  %s1812_s4 = inlined_call_operand.vmem [shape: f32[16,16], index: 4, kind: input, shape index: {}]   ;;  %s1813_s5 = inlined_call_operand.vmem [shape: f32[16,12], index: 5, kind: input, shape index: {}]   ;;  %s1814_s6 = inlined_call_operand.vmem [shape: f32[16,1], index: 6, kind: input, shape index: {}]   ;;  %s1815_s7 = inlined_call_operand.vmem [shape: f32[32,16], index: 7, kind: input, shape index: {}]   ;;  %s1816_s8 = inlined_call_operand.vmem [shape: f32[32,1], index: 8, kind: input, shape index: {}]   ;;  %s1817_s9 = inlined_call_operand.vmem [shape: f32[6,32], index: 9, kind: input, shape index: {}]   ;;  %s1818_s10 = inlined_call_operand.vmem [shape: f32[6,1], index: 10, kind: input, shape index: {}]   ;;  %s1819_s11 = inlined_call_operand.hbm [shape: f32[6,512], index: 11, kind: output, shape index: {0}]   ;;  %s1820_s12 = inlined_call_operand.hbm [shape: f32[16,512], index: 12, kind: output, shape index: {1}]  }
   0x1   :  { %v43_v0 = vld [vmem:[%s1808_s0 + $0x8] sm:$0xff]  ;;  %v45_v2 = vld [vmem:[%s1808_s0 + $0x18] sm:$0xff]  ;;  %vm1592_vm2 = vmpackc.low %vm111_vm0, %vm1511_vm1  ;;  %188 = vmatprep.mubr.f32.mxu0 %v1512_v11  ;;  %289 = vmatprep.mubr.f32.mxu1 %v1512_v11  ;;  %vm92_vm3 = vcmask 97280  }
   0x2   :  { %v47_v1 = vld [vmem:[%s1808_s0 + $0x28] sm:$0xf]  ;;  %v49_v5 = vld [vmem:[%s1808_s0 + $0x38] sm:$0xf]  ;;  %v42_v6 = vld [vmem:[%s1808_s0] sm:$0xff]  ;;  %1381 = vset.pattern.permute.xlu0 %v1513_v14  ;;  %1382 = vset.pattern.permute.xlu1 %v1513_v14 }
   0x3   :  { %v1310_v3 = vpack.c.bf16 %v47_v1, %v43_v0  ;;  %v1316_v7 = vpack.c.bf16 %v49_v5, %v45_v2  ;;  %v46_v8 = vld [vmem:[%s1808_s0 + $0x20] sm:$0xf]  ;;  %v44_v9 = vld [vmem:[%s1808_s0 + $0x10] sm:$0xff]  ;;  %v57_v18 = vld [vmem:[%s1810_s2 + $0x8] sm:$0xff] }
   0x4   :  { %v48_v10 = vld [vmem:[%s1808_s0 + $0x30] sm:$0xf]  ;;  %v1313_v12 = vpack.c.bf16 %v46_v8, %v42_v6  ;;  %v50_v15 = vld [vmem:[%s1809_s1] sm:$0xff]  ;;  %v59_v19 = vld [vmem:[%s1810_s2 + $0x18] sm:$0xff] }
   0x5   :  { %1312 = vmatprep.subr.msk.bf16.mxu0 %vm1592_vm2, %v1310_v3  ;;  %v1319_v13 = vpack.c.bf16 %v48_v10, %v44_v9  ;;  %1318 = vmatprep.subr.msk.bf16.mxu1 %vm1592_vm2, %v1316_v7  ;;  %v56_v16 = vld [vmem:[%s1810_s2] sm:$0xff]  ;;  %v58_v17 = vld [vmem:[%s1810_s2 + $0x10] sm:$0xff]  ;;  %v51_v20 = vld [vmem:[%s1809_s1 + $0x8] sm:$0xff] }
   0x6   :  { %1315 = vmatpush1.bf16.msk.msra.mxu0 %vm1592_vm2, %v1313_v12  ;;  %64 = vperm.xlu0 %1381, %v56_v16  }
   0x7   :  { %1321 = vmatpush1.bf16.msk.msra.mxu1 %vm1592_vm2, %v1319_v13  ;;  %1324 = vmatprep.subr.msk.bf16.mxu0 %vm1592_vm2, %v1310_v3 }
   0x8   :  { %74 = vperm.xlu1 %1382, %v58_v17   ;;  %1330 = vmatprep.subr.msk.bf16.mxu1 %vm1592_vm2, %v1316_v7 }
   0x9   :  { %1258 = vmatmul.mubr.msk.f32.vlgmr.msra.gmra.mrb[0].mxu0 %vm92_vm3, %v50_v15 }
   0xa   :  { %1266 = vmatmul.mubr.msk.f32.vlgmr.msra.gmra.mrb[0].mxu1 %vm92_vm3, %v50_v15  ;;  %194 = vmatprep.mubr.f32.mxu0 %v1512_v11 }
   0xb   :  { %295 = vmatprep.mubr.f32.mxu1 %v1512_v11  ;;  %69 = vperm.xlu0 %1381, %v57_v18  }
   0xc   :  { %1327 = vmatpush1.bf16.msk.msra.mxu0 %vm1592_vm2, %v1313_v12 }
   0xd   :  { %19 = vsyncpa [#allocation5], 0  ;;  %v60_v21 = vld [vmem:[%s1810_s2 + $0x20] sm:$0xff]  ;;  %79 = vperm.xlu1 %1382, %v59_v19   ;;  %1333 = vmatpush1.bf16.msk.msra.mxu1 %vm1592_vm2, %v1319_v13  ;;  %v61_v22 = vld [vmem:[%s1810_s2 + $0x28] sm:$0xff]  ;;  %vm646_vm4 = vcmask 130048   ;;  %vm1076_vm5 = vcmask 261120  }
   0xe   :  { %1259 = vmatmul.mubr.msk.f32.gmra.mrb[2].mxu0 %vm92_vm3, %v51_v20  ;;  %1267 = vmatmul.mubr.msk.f32.gmra.mrb[2].mxu1 %vm92_vm3, %v51_v20  ;;  %v52_v23 = vld [vmem:[%s1809_s1 + $0x10] sm:$0xff]  ;;  %v422_v24 = vld [vmem:[%s1811_s3] sm:$0xff]  ;;  %v423_v25 = vld [vmem:[%s1811_s3 + $0x8] sm:$0xff]  ;;  %s1514_s29 = smov [#allocation4]  }
   0xf   :  { %200 = vmatprep.mubr.f32.mxu0 %v1512_v11  ;;  %301 = vmatprep.mubr.f32.mxu1 %v1512_v11  ;;  %v53_v26 = vld [vmem:[%s1809_s1 + $0x18] sm:$0xff]  ;;  %v807_v27 = vld [vmem:[%s1814_s6] sm:$0xff]  ;;  %v808_v28 = vld [vmem:[%s1814_s6 + $0x8] sm:$0xff]  ;;  %s1241_s6 = sshll.u32 %s1514_s29, 4  ;;  %s1242_s6 = int_to_ptr.vmem [resolvable:$true] %s1241_s6 }
  0x10   :  { %84 = vperm.xlu0 %1381, %v60_v21   ;;  %v54_v29 = vld [vmem:[%s1809_s1 + $0x20] sm:$0xff]  ;;  %v840_v31 = vld [vmem:[%s1816_s8 + $0x8] sm:$0xff]  ;;  %v841_v33 = vld [vmem:[%s1816_s8 + $0x10] sm:$0xff]  ;;  %s1463_s30 = scalar_lea.vmem %s1242_s6, 1024  ;;  %p1468_p1 = scmp.lt.s32.totalorder %s1242_s6, %s1242_s6 }
  0x11   :  { %89 = vperm.xlu1 %1382, %v61_v22   ;;  %v839_v30 = vld [vmem:[%s1816_s8] sm:$0xff]  ;;  %v55_v32 = vld [vmem:[%s1809_s1 + $0x28] sm:$0xff]  ;;  %v842_v34 = vld [vmem:[%s1816_s8 + $0x18] sm:$0xff]  ;;  %p1464_p0 = scmp.ne.s32.totalorder %s1242_s6, %s1463_s30  ;;  %p1469_p2 = scmp.lt.s32.totalorder %s1463_s30, %s1463_s30 }
  0x12   :  { %1260 = vmatmul.mubr.msk.f32.gmra.mrb[4].mxu0 %vm92_vm3, %v52_v23  ;;  %1268 = vmatmul.mubr.msk.f32.gmra.mrb[4].mxu1 %vm92_vm3, %v52_v23  ;;  %v1070_v35 = vld [vmem:[%s1818_s10] sm:$0x3f]  ;;  %v485_v37 = vld [vmem:[%s1813_s5 + $0x8] sm:$0xff] }
  0x13   :  { %206 = vmatprep.mubr.f32.mxu0 %v1512_v11  ;;  %307 = vmatprep.mubr.f32.mxu1 %v1512_v11  ;;  %v484_v36 = vld [vmem:[%s1813_s5] sm:$0xff]  ;;  %p1470_p3 = por %p1469_p2, %p1468_p1 }
  0x14   :  { %426 = vperm.xlu0 %1381, %v422_v24  }
  0x15   :  { %431 = vperm.xlu1 %1382, %v423_v25   ;;  %p1471_p4 = pnand %p1470_p3, %p1464_p0 }
  0x16   :  { %1261 = vmatmul.mubr.msk.f32.gmra.mrb[6].mxu0 %vm92_vm3, %v53_v26  ;;  %1269 = vmatmul.mubr.msk.f32.gmra.mrb[6].mxu1 %vm92_vm3, %v53_v26 }
  0x17   :  { %212 = vmatprep.mubr.f32.mxu0 %v1512_v11  ;;  %313 = vmatprep.mubr.f32.mxu1 %v1512_v11 }
  0x18   :  { %811 = vperm.xlu0 %1381, %v807_v27  }
  0x19   :  { %816 = vperm.xlu1 %1382, %v808_v28  }
  0x1a   :  { %1262 = vmatmul.mubr.msk.f32.gmra.mrb[8].mxu0 %vm92_vm3, %v54_v29  ;;  %1270 = vmatmul.mubr.msk.f32.gmra.mrb[8].mxu1 %vm92_vm3, %v54_v29 }
  0x1b   :  { %218 = vmatprep.mubr.f32.mxu0 %v1512_v11  ;;  %319 = vmatprep.mubr.f32.mxu1 %v1512_v11 }
  0x1c   :  { %845 = vperm.xlu0 %1381, %v839_v30  }
  0x1d   :  { %850 = vperm.xlu1 %1382, %v840_v31  }
  0x1e   :  { %1263 = vmatmul.mubr.msk.f32.gmra.mrb[10].mxu0 %vm92_vm3, %v55_v32  ;;  %1271 = vmatmul.mubr.msk.f32.gmra.mrb[10].mxu1 %vm92_vm3, %v55_v32 }
  0x1f   :  { %556 = vmatprep.mubr.f32.mxu0 %v1512_v11  ;;  %633 = vmatprep.mubr.f32.mxu1 %v1512_v11 }
  0x20   :  { %855 = vperm.xlu0 %1381, %v841_v33  }
  0x21   :  { %860 = vperm.xlu1 %1382, %v842_v34  }
  0x22   :  { %1290 = vmatmul.mubr.msk.f32.vlgmr.msra.gmra.mrb[12].mxu0 %vm92_vm3, %v484_v36  ;;  %1294 = vmatmul.mubr.msk.f32.vlgmr.msra.gmra.mrb[12].mxu1 %vm92_vm3, %v484_v36 }
  0x23   :  { %562 = vmatprep.mubr.f32.mxu0 %v1512_v11  ;;  %639 = vmatprep.mubr.f32.mxu1 %v1512_v11 }
  0x24   :  { %1073 = vperm.xlu0 %1381, %v1070_v35  }
  0x26   :  { %1291 = vmatmul.mubr.msk.f32.gmra.mrb[14].mxu0 %vm92_vm3, %v485_v37  ;;  %1295 = vmatmul.mubr.msk.f32.gmra.mrb[14].mxu1 %vm92_vm3, %v485_v37 }
  0x27   :  { %717 = vmatprep.mubr.f32.mxu0 %v1512_v11  ;;  %794 = vmatprep.mubr.f32.mxu1 %v1512_v11 }
  0x85   :  { %v65_v38 = vpop.permute.xlu0 %64 }
  0x87   :  { %v75_v48 = vpop.permute.xlu1 %74 }
  0x8a   :  { %v70_v47 = vpop.permute.xlu0 %69 }
  0x8c   :  { %v80_v9 = vpop.permute.xlu1 %79 }
  0xdc   :  { %v190_v39 = vpop.f32.mrb[0].mxu0 }
  0xdd   :  { %v291_v40 = vpop.f32.mrb[0].mxu1  ;;  %v191_v41 = vadd.f32 %v190_v39, %v65_v38  ;;  %v192_v43 = vpop.f32.mrb[1].mxu0 }
  0xde   :  { %v292_v42 = vadd.f32 %v291_v40, %v65_v38  ;;  %v293_v44 = vpop.f32.mrb[1].mxu1  ;;  %v193_v45 = vadd.f32 %v192_v43, %v65_v38  ;;  %v85_v43 = vpop.permute.xlu0 %84 }
  0xdf   :  { %v294_v46 = vadd.f32 %v293_v44, %v65_v38  ;;  %v1272_v49 = vmul.f32 -1.442695, %v191_v41 }
  0xe0   :  { %v1274_v50 = vmul.f32 -1.442695, %v292_v42  ;;  %v1273_v51 = vmul.f32 -1.442695, %v193_v45 }
  0xe1   :  { %v1275_v52 = vmul.f32 -1.442695, %v294_v46  ;;  %v196_v53 = vpop.f32.mrb[2].mxu0  ;;  %v297_v54 = vpop.f32.mrb[2].mxu1  ;;  %1383 = vpow2.f32 %v1272_v49 }
  0xe2   :  { %v197_v55 = vadd.f32 %v196_v53, %v70_v47  ;;  %v298_v56 = vadd.f32 %v297_v54, %v70_v47  ;;  %v198_v57 = vpop.f32.mrb[3].mxu0  ;;  %v299_v58 = vpop.f32.mrb[3].mxu1  ;;  %1385 = vpow2.f32 %v1274_v50 }
  0xe3   :  { %v199_v59 = vadd.f32 %v198_v57, %v70_v47  ;;  %v300_v60 = vadd.f32 %v299_v58, %v70_v47  ;;  %1387 = vpow2.f32 %v1273_v51 }
  0xe4   :  { %v1276_v61 = vmul.f32 -1.442695, %v197_v55  ;;  %v1278_v62 = vmul.f32 -1.442695, %v298_v56  ;;  %1389 = vpow2.f32 %v1275_v52  ;;  %v90_v55 = vpop.permute.xlu1 %89 }
  0xe5   :  { %v1277_v63 = vmul.f32 -1.442695, %v199_v59  ;;  %v1279_v0 = vmul.f32 -1.442695, %v300_v60  ;;  %v202_v1 = vpop.f32.mrb[4].mxu0  ;;  %v303_v2 = vpop.f32.mrb[4].mxu1 }
  0xe6   :  { %1391 = vpow2.f32 %v1276_v61  ;;  %v203_v3 = vadd.f32 %v202_v1, %v75_v48  ;;  %v304_v4 = vadd.f32 %v303_v2, %v75_v48  ;;  %v204_v5 = vpop.f32.mrb[5].mxu0  ;;  %v305_v6 = vpop.f32.mrb[5].mxu1 }
  0xe7   :  { %1393 = vpow2.f32 %v1278_v62  ;;  %v205_v7 = vadd.f32 %v204_v5, %v75_v48  ;;  %v306_v8 = vadd.f32 %v305_v6, %v75_v48  ;;  %v427_v61 = vpop.permute.xlu0 %426 }
  0xe8   :  { %1395 = vpow2.f32 %v1277_v63  ;;  %v1280_v10 = vmul.f32 -1.442695, %v203_v3  ;;  %v1282_v12 = vmul.f32 -1.442695, %v304_v4 }
  0xe9   :  { %1397 = vpow2.f32 %v1279_v0  ;;  %v1281_v13 = vmul.f32 -1.442695, %v205_v7  ;;  %v1283_v14 = vmul.f32 -1.442695, %v306_v8  ;;  %v208_v15 = vpop.f32.mrb[6].mxu0  ;;  %v309_v16 = vpop.f32.mrb[6].mxu1 }
  0xea   :  { %1399 = vpow2.f32 %v1280_v10  ;;  %v209_v17 = vadd.f32 %v208_v15, %v80_v9  ;;  %v210_v18 = vpop.f32.mrb[7].mxu0  ;;  %v311_v19 = vpop.f32.mrb[7].mxu1  ;;  %v310_v47 = vadd.f32 %v309_v16, %v80_v9 }
  0xeb   :  { %1401 = vpow2.f32 %v1282_v12  ;;  %v1384_v20 = vpop.eup %1383  ;;  %v211_v50 = vadd.f32 %v210_v18, %v80_v9  ;;  %v312_v53 = vadd.f32 %v311_v19, %v80_v9 }
  0xec   :  { %1403 = vpow2.f32 %v1281_v13  ;;  %v1284_v21 = vmul.f32 -1.442695, %v209_v17  ;;  %v1386_v22 = vpop.eup %1385  ;;  %v350_v23 = vadd.f32 1.0, %v1384_v20  ;;  %v1286_v59 = vmul.f32 -1.442695, %v310_v47  ;;  %v432_v13 = vpop.permute.xlu1 %431 }
  0xed   :  { %1405 = vpow2.f32 %v1283_v14  ;;  %v214_v24 = vpop.f32.mrb[8].mxu0  ;;  %v1388_v25 = vpop.eup %1387  ;;  %v352_v26 = vadd.f32 1.0, %v1386_v22  ;;  %v1285_v63 = vmul.f32 -1.442695, %v211_v50  ;;  %v1287_v1 = vmul.f32 -1.442695, %v312_v53 }
  0xee   :  { %1407 = vpow2.f32 %v1284_v21  ;;  %v315_v27 = vpop.f32.mrb[8].mxu1  ;;  %v216_v28 = vpop.f32.mrb[9].mxu0  ;;  %v351_v30 = vadd.f32 1.0, %v1388_v25  ;;  %v215_v2 = vadd.f32 %v214_v24, %v85_v43 }
  0xef   :  { %v1390_v29 = vpop.eup %1389  ;;  %1409 = vrcp.f32 %v350_v23  ;;  %v317_v31 = vpop.f32.mrb[9].mxu1  ;;  %v316_v5 = vadd.f32 %v315_v27, %v85_v43  ;;  %v217_v9 = vadd.f32 %v216_v28, %v85_v43 }
  0xf0   :  { %v1392_v32 = vpop.eup %1391  ;;  %1411 = vrcp.f32 %v352_v26  ;;  %v353_v33 = vadd.f32 1.0, %v1390_v29  ;;  %v318_v15 = vadd.f32 %v317_v31, %v85_v43 }
  0xf1   :  { %v1394_v34 = vpop.eup %1393  ;;  %1413 = vrcp.f32 %v351_v30  ;;  %v354_v35 = vadd.f32 1.0, %v1392_v32  ;;  %v220_v36 = vpop.f32.mrb[10].mxu0 }
  0xf2   :  { %v1730_v37 = vpop.f32.mrb[10].mxu1  ;;  %v1396_v38 = vpop.eup %1395  ;;  %1415 = vrcp.f32 %v353_v33  ;;  %v356_v39 = vadd.f32 1.0, %v1394_v34  ;;  %v221_v19 = vadd.f32 %v220_v36, %v90_v55 }
  0xf3   :  { %v1732_v40 = vpop.f32.mrb[11].mxu0  ;;  %v1734_v41 = vpop.f32.mrb[11].mxu1  ;;  %1417 = vrcp.f32 %v354_v35  ;;  %v355_v44 = vadd.f32 1.0, %v1396_v38  ;;  %v322_v23 = vadd.f32 %v1730_v37, %v90_v55 }
  0xf4   :  { %v1398_v42 = vpop.eup %1397  ;;  %1419 = vrcp.f32 %v356_v39  ;;  %v223_v27 = vadd.f32 %v1732_v40, %v90_v55  ;;  %v324_v31 = vadd.f32 %v1734_v41, %v90_v55 }
  0xf5   :  { %v1400_v45 = vpop.eup %1399  ;;  %v357_v46 = vadd.f32 1.0, %v1398_v42  ;;  %1421 = vrcp.f32 %v355_v44 }
  0xf6   :  { %v1402_v48 = vpop.eup %1401  ;;  %v398_v49 = vadd.f32 1.0, %v1400_v45 }
  0xf7   :  { %v1404_v51 = vpop.eup %1403  ;;  %1423 = vrcp.f32 %v357_v46  ;;  %v400_v52 = vadd.f32 1.0, %v1402_v48 }
  0xf8   :  { %v1406_v54 = vpop.eup %1405  ;;  %1425 = vrcp.f32 %v398_v49  ;;  %v399_v56 = vadd.f32 1.0, %v1404_v51 }
  0xf9   :  { %v1408_v57 = vpop.eup %1407  ;;  %1427 = vrcp.f32 %v400_v52  ;;  %v401_v58 = vadd.f32 1.0, %v1406_v54 }
  0xfa   :  { %v1410_v60 = vpop.eup %1409  ;;  %1429 = vrcp.f32 %v399_v56  ;;  %v402_v62 = vadd.f32 1.0, %v1408_v57 }
  0xfb   :  { %v1412_v0 = vpop.eup %1411  ;;  %1431 = vrcp.f32 %v401_v58  ;;  %v434_v3 = vmul.f32 %v1410_v60, %v427_v61 }
  0xfc   :  { %v1414_v4 = vpop.eup %1413  ;;  %1433 = vrcp.f32 %v402_v62  ;;  %v436_v6 = vmul.f32 %v1412_v0, %v427_v61 }
  0xfd   :  { %v1416_v7 = vpop.eup %1415  ;;  %1435 = vpow2.f32 %v1286_v59  ;;  %v442_v8 = vadd.f32 %v434_v3, %v215_v2  ;;  %v435_v10 = vmul.f32 %v1414_v4, %v427_v61 }
  0xfe   :  { %v1418_v12 = vpop.eup %1417  ;;  %1437 = vpow2.f32 %v1285_v63  ;;  %v444_v14 = vadd.f32 %v436_v6, %v316_v5  ;;  %v437_v16 = vmul.f32 %v1416_v7, %v427_v61 }
  0xff   :  { %v1420_v17 = vpop.eup %1419  ;;  %1439 = vpow2.f32 %v1287_v1  ;;  %v443_v18 = vadd.f32 %v435_v10, %v217_v9  ;;  %v438_v20 = vmul.f32 %v1418_v12, %v432_v13 }
 0x100   :  { %v1422_v21 = vpop.eup %1421  ;;  %1441 = vtanh.f32 %v442_v8  ;;  %v445_v22 = vadd.f32 %v437_v16, %v318_v15  ;;  %v440_v24 = vmul.f32 %v1420_v17, %v432_v13 }
 0x101   :  { %v1424_v25 = vpop.eup %1423  ;;  %1443 = vtanh.f32 %v444_v14  ;;  %v446_v26 = vadd.f32 %v438_v20, %v221_v19  ;;  %v439_v28 = vmul.f32 %v1422_v21, %v432_v13  ;;  %v483_v14 = vld [vmem:[%s1812_s4 + $0x8] sm:$0xff]  ;;  %v817_v21 = vpop.permute.xlu1 %816 }
 0x102   :  { %v1426_v29 = vpop.eup %1425  ;;  %1445 = vtanh.f32 %v443_v18  ;;  %v448_v30 = vadd.f32 %v440_v24, %v322_v23  ;;  %v441_v32 = vmul.f32 %v1424_v25, %v432_v13  ;;  %v482_v13 = vld [vmem:[%s1812_s4] sm:$0xff]  ;;  %v812_v18 = vpop.permute.xlu0 %811 }
 0x103   :  { %v1428_v33 = vpop.eup %1427  ;;  %1447 = vtanh.f32 %v445_v22  ;;  %v447_v34 = vadd.f32 %v439_v28, %v223_v27  ;;  %v458_v42 = vsub.f32 1.0, %v1426_v29 }
 0x104   :  { %v1430_v35 = vpop.eup %1429  ;;  %1449 = vtanh.f32 %v446_v26  ;;  %v449_v36 = vadd.f32 %v441_v32, %v324_v31  ;;  %v460_v40 = vsub.f32 1.0, %v1428_v33 }
 0x105   :  { %v1432_v37 = vpop.eup %1431  ;;  %1451 = vtanh.f32 %v448_v30  ;;  %v459_v46 = vsub.f32 1.0, %v1430_v35 }
 0x106   :  { %v1434_v38 = vpop.eup %1433  ;;  %1453 = vtanh.f32 %v447_v34  ;;  %v461_v48 = vsub.f32 1.0, %v1432_v37 }
 0x107   :  { %v1436_v39 = vpop.eup %1435  ;;  %1455 = vtanh.f32 %v449_v36  ;;  %v462_v55 = vsub.f32 1.0, %v1434_v38 }
 0x108   :  { %v1438_v43 = vpop.eup %1437  ;;  %v404_v44 = vadd.f32 1.0, %v1436_v39 }
 0x109   :  { %v1440_v45 = vpop.eup %1439  ;;  %v403_v47 = vadd.f32 1.0, %v1438_v43 }
 0x10a   :  { %v1442_v41 = vpop.eup %1441  ;;  %1457 = vrcp.f32 %v404_v44  ;;  %v405_v49 = vadd.f32 1.0, %v1440_v45 }
 0x10b   :  { %v1444_v50 = vpop.eup %1443  ;;  %1459 = vrcp.f32 %v403_v47  ;;  %v466_v51 = vmul.f32 %v1442_v41, %v458_v42  ;;  %v836_v47 = vld [vmem:[%s1815_s7 + $0x8] sm:$0xff]  ;;  %v837_v41 = vld [vmem:[%s1815_s7 + $0x10] sm:$0xff] }
 0x10c   :  { %v1446_v52 = vpop.eup %1445  ;;  %1461 = vrcp.f32 %v405_v49  ;;  %v468_v53 = vmul.f32 %v1444_v50, %v460_v40 }
 0x10d   :  { %v1448_v54 = vpop.eup %1447  ;;  %v467_v56 = vmul.f32 %v1446_v52, %v459_v46  ;;  %474 = vst [vmem:[#allocation4] sm:$0xff] %v466_v51  ;;  %v835_v46 = vld [vmem:[%s1815_s7] sm:$0xff]  ;;  %v846_v52 = vpop.permute.xlu0 %845 }
 0x10e   :  { %v1450_v57 = vpop.eup %1449  ;;  %v469_v58 = vmul.f32 %v1448_v54, %v461_v48  ;;  %476 = vst [vmem:[#allocation4 + $0x10] sm:$0xff] %v468_v53  ;;  %v838_v48 = vld [vmem:[%s1815_s7 + $0x18] sm:$0xff] }
 0x10f   :  { %475 = vst [vmem:[#allocation4 + $0x8] sm:$0xff] %v467_v56  ;;  %v470_v59 = vmul.f32 %v1450_v57, %v462_v55  ;;  %v1452_v60 = vpop.eup %1451  ;;  %v851_v55 = vpop.permute.xlu1 %850 }
 0x110   :  { %477 = vst [vmem:[#allocation4 + $0x18] sm:$0xff] %v469_v58  ;;  %v1454_v62 = vpop.eup %1453 }
 0x111   :  { %478 = vst [vmem:[#allocation4 + $0x20] sm:$0xff] %v470_v59  ;;  %v1336_v61 = vpack.c.bf16 %v470_v59, %v466_v51  ;;  %v1456_v63 = vpop.eup %1455 }
 0x114   :  { %v1458_v0 = vpop.eup %1457 }
 0x115   :  { %v1460_v1 = vpop.eup %1459  ;;  %v464_v2 = vsub.f32 1.0, %v1458_v0 }
 0x116   :  { %v1462_v3 = vpop.eup %1461  ;;  %v463_v4 = vsub.f32 1.0, %v1460_v1 }
 0x117   :  { %v465_v5 = vsub.f32 1.0, %v1462_v3  ;;  %v472_v6 = vmul.f32 %v1452_v60, %v464_v2 }
 0x118   :  { %v471_v7 = vmul.f32 %v1454_v62, %v463_v4 }
 0x119   :  { %v473_v8 = vmul.f32 %v1456_v63, %v465_v5  ;;  %480 = vst [vmem:[#allocation4 + $0x30] sm:$0xff] %v472_v6  ;;  %v1340_v9 = vpack.c.bf16 %v472_v6, %v468_v53 }
 0x11a   :  { %479 = vst [vmem:[#allocation4 + $0x28] sm:$0xff] %v471_v7  ;;  %v1334_v10 = vpack.c.bf16 %v471_v7, %v467_v56 }
 0x11b   :  { %481 = vst [vmem:[#allocation4 + $0x38] sm:$0xff] %v473_v8  ;;  %v1338_v12 = vpack.c.bf16 %v473_v8, %v469_v58 }
 0x11c   :  { %1335 = vmatprep.subr.bf16.mxu0 %v1334_v10 }
 0x11d   :  { %1339 = vmatprep.subr.bf16.mxu1 %v1338_v12  ;;  %1337 = vmatpush1.bf16.msra.mxu0 %v1336_v61 }
 0x11e   :  { %1341 = vmatpush1.bf16.msra.mxu1 %v1340_v9 }
 0x120   :  { %1296 = vmatmul.mubr.msk.f32.vlgmr.msra.gmra.mrb[12].mxu0 %vm646_vm4, %v482_v13 }
 0x121   :  { %1298 = vmatmul.mubr.msk.f32.vlgmr.msra.gmra.mrb[12].mxu1 %vm646_vm4, %v482_v13  ;;  %723 = vmatprep.mubr.f32.mxu0 %v1512_v11 }
 0x122   :  { %800 = vmatprep.mubr.f32.mxu1 %v1512_v11 }
 0x124   :  { %1297 = vmatmul.mubr.msk.f32.gmra.mrb[14].mxu0 %vm646_vm4, %v483_v14 }
 0x125   :  { %1299 = vmatmul.mubr.msk.f32.gmra.mrb[14].mxu1 %vm646_vm4, %v483_v14  ;;  %939 = vmatprep.mubr.f32.mxu0 %v1512_v11 }
 0x126   :  { %1028 = vmatprep.mubr.f32.mxu1 %v1512_v11 }
 0x1f3   :  { %v719_v15 = vpop.f32.mrb[12].mxu0 }
 0x1f4   :  { %v796_v16 = vpop.f32.mrb[12].mxu1  ;;  %v721_v17 = vpop.f32.mrb[13].mxu0  ;;  %v819_v20 = vadd.f32 %v812_v18, %v719_v15 }
 0x1f5   :  { %v798_v19 = vpop.f32.mrb[13].mxu1  ;;  %v821_v22 = vadd.f32 %v812_v18, %v796_v16  ;;  %v820_v23 = vadd.f32 %v812_v18, %v721_v17  ;;  %v856_v15 = vpop.permute.xlu0 %855 }
 0x1f6   :  { %v822_v25 = vadd.f32 %v812_v18, %v798_v19  ;;  %v827_v32 = vmax.f32 %v819_v20, 0.0 }
 0x1f7   :  { %v725_v24 = vpop.f32.mrb[14].mxu0  ;;  %v829_v35 = vmax.f32 %v821_v22, 0.0  ;;  %v828_v36 = vmax.f32 %v820_v23, 0.0 }
 0x1f8   :  { %v823_v26 = vadd.f32 %v817_v21, %v725_v24  ;;  %v802_v27 = vpop.f32.mrb[14].mxu1  ;;  %v727_v28 = vpop.f32.mrb[15].mxu0  ;;  %v830_v39 = vmax.f32 %v822_v25, 0.0 }
 0x1f9   :  { %v825_v29 = vadd.f32 %v817_v21, %v802_v27  ;;  %v824_v30 = vadd.f32 %v817_v21, %v727_v28  ;;  %v804_v31 = vpop.f32.mrb[15].mxu1 }
 0x1fa   :  { %v831_v33 = vmax.f32 %v823_v26, 0.0  ;;  %v826_v34 = vadd.f32 %v817_v21, %v804_v31  ;;  %v861_v21 = vpop.permute.xlu1 %860 }
 0x1fb   :  { %v833_v37 = vmax.f32 %v825_v29, 0.0  ;;  %v832_v38 = vmax.f32 %v824_v30, 0.0 }
 0x1fc   :  { %v1344_v42 = vpack.c.bf16 %v831_v33, %v827_v32  ;;  %v834_v43 = vmax.f32 %v826_v34, 0.0 }
 0x1fd   :  { %v1348_v40 = vpack.c.bf16 %v833_v37, %v829_v35  ;;  %v1342_v44 = vpack.c.bf16 %v832_v38, %v828_v36 }
 0x1fe   :  { %v1346_v45 = vpack.c.bf16 %v834_v43, %v830_v39 }
 0x1ff   :  { %1343 = vmatprep.subr.bf16.mxu0 %v1342_v44 }
 0x200   :  { %1347 = vmatprep.subr.bf16.mxu1 %v1346_v45  ;;  %1345 = vmatpush1.bf16.msra.mxu0 %v1344_v42 }
 0x201   :  { %1349 = vmatpush1.bf16.msra.mxu1 %v1348_v40 }
 0x203   :  { %1300 = vmatmul.mubr.msk.f32.vlgmr.msra.gmra.mrb[16].mxu0 %vm646_vm4, %v835_v46 }
 0x204   :  { %1304 = vmatmul.mubr.msk.f32.vlgmr.msra.gmra.mrb[16].mxu1 %vm646_vm4, %v835_v46  ;;  %945 = vmatprep.mubr.f32.mxu0 %v1512_v11  ;;  %v1069_v46 = vld [vmem:[%s1817_s9] sm:$0x3f] }
 0x205   :  { %1034 = vmatprep.mubr.f32.mxu1 %v1512_v11 }
 0x207   :  { %1301 = vmatmul.mubr.msk.f32.gmra.mrb[18].mxu0 %vm646_vm4, %v836_v47 }
 0x208   :  { %1305 = vmatmul.mubr.msk.f32.gmra.mrb[18].mxu1 %vm646_vm4, %v836_v47  ;;  %951 = vmatprep.mubr.f32.mxu0 %v1512_v11 }
 0x209   :  { %1040 = vmatprep.mubr.f32.mxu1 %v1512_v11 }
 0x20b   :  { %1302 = vmatmul.mubr.msk.f32.gmra.mrb[20].mxu0 %vm646_vm4, %v837_v41 }
 0x20c   :  { %1306 = vmatmul.mubr.msk.f32.gmra.mrb[20].mxu1 %vm646_vm4, %v837_v41  ;;  %957 = vmatprep.mubr.f32.mxu0 %v1512_v11 }
 0x20d   :  { %1046 = vmatprep.mubr.f32.mxu1 %v1512_v11 }
 0x20f   :  { %1303 = vmatmul.mubr.msk.f32.gmra.mrb[22].mxu0 %vm646_vm4, %v838_v48 }
 0x210   :  { %1307 = vmatmul.mubr.msk.f32.gmra.mrb[22].mxu1 %vm646_vm4, %v838_v48  ;;  %1144 = vmatprep.mubr.f32.mxu0 %v1512_v11 }
 0x211   :  { %1215 = vmatprep.mubr.f32.mxu1 %v1512_v11 }
 0x2d6   :  { %v941_v49 = vpop.f32.mrb[16].mxu0 }
 0x2d7   :  { %v1030_v50 = vpop.f32.mrb[16].mxu1  ;;  %v943_v51 = vpop.f32.mrb[17].mxu0  ;;  %v942_v54 = vadd.f32 %v941_v49, %v846_v52 }
 0x2d8   :  { %v1032_v53 = vpop.f32.mrb[17].mxu1  ;;  %v1031_v56 = vadd.f32 %v1030_v50, %v846_v52  ;;  %v944_v57 = vadd.f32 %v943_v51, %v846_v52 }
 0x2d9   :  { %v1033_v59 = vadd.f32 %v1032_v53, %v846_v52  ;;  %v1053_v2 = vmax.f32 %v942_v54, 0.0 }
 0x2da   :  { %v947_v58 = vpop.f32.mrb[18].mxu0  ;;  %v1055_v4 = vmax.f32 %v1031_v56, 0.0  ;;  %v1054_v5 = vmax.f32 %v944_v57, 0.0 }
 0x2db   :  { %v948_v60 = vadd.f32 %v947_v58, %v851_v55  ;;  %v1036_v61 = vpop.f32.mrb[18].mxu1  ;;  %v949_v62 = vpop.f32.mrb[19].mxu0  ;;  %v1056_v9 = vmax.f32 %v1033_v59, 0.0 }
 0x2dc   :  { %v1037_v63 = vadd.f32 %v1036_v61, %v851_v55  ;;  %v950_v0 = vadd.f32 %v949_v62, %v851_v55  ;;  %v1038_v1 = vpop.f32.mrb[19].mxu1 }
 0x2dd   :  { %v1057_v3 = vmax.f32 %v948_v60, 0.0  ;;  %v1039_v11 = vadd.f32 %v1038_v1, %v851_v55 }
 0x2de   :  { %v1059_v6 = vmax.f32 %v1037_v63, 0.0  ;;  %v1058_v7 = vmax.f32 %v950_v0, 0.0  ;;  %v953_v8 = vpop.f32.mrb[20].mxu0 }
 0x2df   :  { %v1352_v10 = vpack.c.bf16 %v1057_v3, %v1053_v2  ;;  %v1060_v12 = vmax.f32 %v1039_v11, 0.0  ;;  %v1042_v13 = vpop.f32.mrb[20].mxu1  ;;  %v955_v14 = vpop.f32.mrb[21].mxu0  ;;  %v954_v20 = vadd.f32 %v953_v8, %v856_v15 }
 0x2e0   :  { %v1360_v16 = vpack.c.bf16 %v1059_v6, %v1055_v4  ;;  %v1350_v17 = vpack.c.bf16 %v1058_v7, %v1054_v5  ;;  %v1044_v18 = vpop.f32.mrb[21].mxu1  ;;  %v1043_v22 = vadd.f32 %v1042_v13, %v856_v15  ;;  %v956_v23 = vadd.f32 %v955_v14, %v856_v15 }
 0x2e1   :  { %v1358_v19 = vpack.c.bf16 %v1060_v12, %v1056_v9  ;;  %v1045_v25 = vadd.f32 %v1044_v18, %v856_v15  ;;  %v1061_v32 = vmax.f32 %v954_v20, 0.0 }
 0x2e2   :  { %v959_v24 = vpop.f32.mrb[22].mxu0  ;;  %1351 = vmatprep.subr.bf16.mxu0 %v1350_v17  ;;  %v1063_v35 = vmax.f32 %v1043_v22, 0.0  ;;  %v1062_v36 = vmax.f32 %v956_v23, 0.0 }
 0x2e3   :  { %v960_v26 = vadd.f32 %v959_v24, %v861_v21  ;;  %v1048_v27 = vpop.f32.mrb[22].mxu1  ;;  %1359 = vmatprep.subr.bf16.mxu1 %v1358_v19  ;;  %v961_v28 = vpop.f32.mrb[23].mxu0  ;;  %1353 = vmatpush1.bf16.msra.mxu0 %v1352_v10  ;;  %v1064_v39 = vmax.f32 %v1045_v25, 0.0 }
 0x2e4   :  { %v1049_v29 = vadd.f32 %v1048_v27, %v861_v21  ;;  %v962_v30 = vadd.f32 %v961_v28, %v861_v21  ;;  %v1050_v31 = vpop.f32.mrb[23].mxu1  ;;  %1361 = vmatpush1.bf16.msra.mxu1 %v1360_v16 }
 0x2e5   :  { %v1065_v33 = vmax.f32 %v960_v26, 0.0  ;;  %v1051_v34 = vadd.f32 %v1050_v31, %v861_v21 }
 0x2e6   :  { %v1067_v37 = vmax.f32 %v1049_v29, 0.0  ;;  %v1066_v38 = vmax.f32 %v962_v30, 0.0 }
 0x2e7   :  { %v1356_v42 = vpack.c.bf16 %v1065_v33, %v1061_v32  ;;  %v1068_v43 = vmax.f32 %v1051_v34, 0.0 }
 0x2e8   :  { %v1364_v40 = vpack.c.bf16 %v1067_v37, %v1063_v35  ;;  %v1354_v44 = vpack.c.bf16 %v1066_v38, %v1062_v36 }
 0x2e9   :  { %v1362_v45 = vpack.c.bf16 %v1068_v43, %v1064_v39 }
 0x2ea   :  { %1355 = vmatprep.subr.bf16.mxu0 %v1354_v44 }
 0x2eb   :  { %1363 = vmatprep.subr.bf16.mxu1 %v1362_v45  ;;  %1357 = vmatpush1.bf16.msra.mxu0 %v1356_v42 }
 0x2ec   :  { %1365 = vmatpush1.bf16.msra.mxu1 %v1364_v40 }
 0x2ee   :  { %1308 = vmatmul.mubr.msk.f32.vlgmr.msra.gmra.mrb[24].mxu0 %vm1076_vm5, %v1069_v46 }
 0x2ef   :  { %1309 = vmatmul.mubr.msk.f32.vlgmr.msra.gmra.mrb[24].mxu1 %vm1076_vm5, %v1069_v46 }
 0x2f0   :  { %1474 = shalt.err (!%p1471_p4)
}
 0x2f1   :  { %s1475_s15 = scalar_lea.hbm %s1820_s12, 1024 }
 0x2f2   :  { %p1476_p5 = scmp.ne.s32.totalorder %s1820_s12, %s1475_s15  ;;  %p1479_p6 = scmp.lt.u32.totalorder %s1475_s15, %s1820_s12 }
 0x2f4   :  { %p1481_p7 = pnand %p1479_p6, %p1476_p5 }
 0x2f6   :  { %1484 = shalt.err (!%p1481_p7)
}
 0x2f7   :  { %s1515_s18 = smov 512   ;;  %s1516_s0 = smov 32   ;;  %v1074_v47 = vpop.permute.xlu0 %1073 }
 0x2f8   :  { %1247 = dma.vmem_to_hbm [thread:$0]  %s1242_s6, 1024, %s1820_s12, [#allocation5], %s1515_s18, %s1515_s18, %s1516_s0  }
 0x2f9   :  { %s1517_s2 = smov [#allocation2]  }
 0x2fa   :  { %s1232_s5 = sshll.u32 %s1517_s2, 4  ;;  %s1233_s5 = int_to_ptr.vmem [resolvable:$true] %s1232_s5 }
 0x2fb   :  { %s1485_s10 = scalar_lea.vmem %s1233_s5, 512  ;;  %p1490_p9 = scmp.lt.s32.totalorder %s1233_s5, %s1233_s5 }
 0x2fc   :  { %p1486_p8 = scmp.ne.s32.totalorder %s1233_s5, %s1485_s10  ;;  %p1491_p10 = scmp.lt.s32.totalorder %s1485_s10, %s1485_s10 }
 0x2fe   :  { %p1492_p11 = por %p1491_p10, %p1490_p9 }
 0x300   :  { %p1493_p12 = pnand %p1492_p11, %p1486_p8 }
 0x3c1   :  { %v1146_v41 = vpop.f32.mrb[24].mxu0 }
 0x3c2   :  { %v1147_v48 = vadd.f32 %v1146_v41, %v1074_v47  ;;  %v1217_v49 = vpop.f32.mrb[24].mxu1  ;;  %v1148_v50 = vpop.f32.mrb[25].mxu0 }
 0x3c3   :  { %v1218_v51 = vadd.f32 %v1217_v49, %v1074_v47  ;;  %v1149_v52 = vadd.f32 %v1148_v50, %v1074_v47  ;;  %v1219_v53 = vpop.f32.mrb[25].mxu1 }
 0x3c4   :  { %1222 = vst [vmem:[#allocation2] sm:$0x3f] %v1147_v48  ;;  %v1220_v54 = vadd.f32 %v1219_v53, %v1074_v47 }
 0x3c5   :  { %1224 = vst [vmem:[#allocation2 + $0x10] sm:$0x3f] %v1218_v51  ;;  %1223 = vst [vmem:[#allocation2 + $0x8] sm:$0x3f] %v1149_v52 }
 0x3c6   :  { %1225 = vst [vmem:[#allocation2 + $0x18] sm:$0x3f] %v1220_v54 }
 0x3c7   :  { %1496 = shalt.err (!%p1493_p12)
}
 0x3c8   :  { %s1497_s21 = scalar_lea.hbm %s1819_s11, 512 }
 0x3c9   :  { %p1498_p13 = scmp.ne.s32.totalorder %s1819_s11, %s1497_s21  ;;  %p1501_p0 = scmp.lt.u32.totalorder %s1497_s21, %s1819_s11 }
 0x3cb   :  { %p1503_p1 = pnand %p1501_p0, %p1498_p13 }
 0x3cd   :  { %1506 = shalt.err (!%p1503_p1)
}
 0x3ce   :  { %1235 = dma.vmem_to_hbm [thread:$0]  %s1233_s5, 512, %s1819_s11, [#allocation3]  }
 0x3cf   :  { %1507 = dma.done.wait [#allocation3], 512  }
 0x3d0   :  { %1508 = vsyncadd [#allocation3], 4294966784 }
 0x3d1   :  { %1509 = dma.done.wait [#allocation5], 1024  }
 0x3d2   :  { %1510 = vsyncadd [#allocation5], 4294966272 }
 0x3d3   :  { %1254 = vsyncpa [#allocation3], 1 }
 0x3d4   :  { %1255 = vsyncpa [#allocation5], 1 }

</bundles_post_ra>
